<compile_context>
chip_gen: v5e
topology: v5e:2x2
jax: 0.10.0
libtpu: 0.0.40
codegen_flags: <defaults>
</compile_context>

<pallas_src>
import functools

import jax
import jax.numpy as jnp
from jax.experimental import pallas as pl
from jax.experimental.pallas import tpu as pltpu

NUM_CLASSES = 10
NPAD = 128          # padded class width (lane-dense)
H1_PAD = 256        # 200 -> 256
H2_PAD = 128        # 100 -> 128
IN_FEATURES = 784


def _round_up(x, m):
    return ((x + m - 1) // m) * m


def _pad2(a, shape):
    return jnp.pad(a, ((0, shape[0] - a.shape[0]), (0, shape[1] - a.shape[1])))


def fcnn_kernel(x_ref, w1_ref, b1_ref, w2_ref, b2_ref, w3_ref, b3_ref, out_ref):
    # x: (TB, 784) bf16; weights bf16 (padded); biases f32 (padded).
    x = x_ref[...]

    # fc1 + ReLU  (bf16 MXU, f32 accumulate)
    h1 = jnp.dot(x, w1_ref[...], preferred_element_type=jnp.float32) + b1_ref[...]
    h1 = jnp.maximum(h1, 0.0)

    # fc2 + ReLU
    h2 = jnp.dot(h1.astype(jnp.bfloat16), w2_ref[...],
                 preferred_element_type=jnp.float32) + b2_ref[...]
    h2 = jnp.maximum(h2, 0.0)

    # fc3 (logits) -- padded class columns are exactly zero (zero weights/bias).
    logits = jnp.dot(h2.astype(jnp.bfloat16), w3_ref[...],
                     preferred_element_type=jnp.float32) + b3_ref[...]

    # softmax over the REAL class columns only (mask out the padding).
    col = jax.lax.broadcasted_iota(jnp.int32, logits.shape, 1)
    masked = jnp.where(col < NUM_CLASSES, logits, jnp.float32(-1e30))
    m = jnp.max(masked, axis=-1, keepdims=True)
    e = jnp.exp(masked - m)
    inv = pl.reciprocal(jnp.sum(e, axis=-1, keepdims=True), approx=True)
    probs = e * inv

    # single lane-dense output slab: [logits_padded | probs_padded]
    out_ref[:, 0:NPAD] = logits
    out_ref[:, NPAD:2 * NPAD] = probs


@functools.partial(jax.jit, static_argnames=("tb_max",))
def fc_nn_forward(x_nchw, params, tb_max=512):
    """Returns (logits, probs). logits matches PyTorch forward()'s return value;
    probs matches the stored `self.out`."""
    w1, b1, w2, b2, w3, b3 = params
    B = x_nchw.shape[0]
    x = x_nchw.reshape(B, IN_FEATURES).astype(jnp.bfloat16)  # fc.view(-1, 784)

    # Batch tile: multiple of 8, capped (sized against v7x 32 MiB scoped VMEM).
    TB = min(tb_max, _round_up(B, 8))
    Bp = _round_up(B, TB)
    if Bp != B:
        x = jnp.pad(x, ((0, Bp - B), (0, 0)))

    # Pad feature dims to lane multiples of 128; weights bf16, biases f32.
    w1p = _pad2(w1, (IN_FEATURES, H1_PAD)).astype(jnp.bfloat16)
    b1p = _pad2(b1, (1, H1_PAD)).astype(jnp.float32)
    w2p = _pad2(w2, (H1_PAD, H2_PAD)).astype(jnp.bfloat16)
    b2p = _pad2(b2, (1, H2_PAD)).astype(jnp.float32)
    w3p = _pad2(w3, (H2_PAD, NPAD)).astype(jnp.bfloat16)
    b3p = _pad2(b3, (1, NPAD)).astype(jnp.float32)

    # Weights/biases stay resident in VMEM across all grid steps.
    def resident(arr):
        return pl.BlockSpec(arr.shape, lambda i: (0, 0))

    out = pl.pallas_call(
        fcnn_kernel,
        out_shape=jax.ShapeDtypeStruct((Bp, 2 * NPAD), jnp.float32),
        grid=(Bp // TB,),
        in_specs=[
            pl.BlockSpec((TB, IN_FEATURES), lambda i: (i, 0)),
            resident(w1p), resident(b1p),
            resident(w2p), resident(b2p),
            resident(w3p), resident(b3p),
        ],
        out_specs=pl.BlockSpec((TB, 2 * NPAD), lambda i: (i, 0)),
        compiler_params=pltpu.CompilerParams(
            dimension_semantics=("parallel",)),
    )(x, w1p, b1p, w2p, b2p, w3p, b3p)

    logits = out[:B, 0:NUM_CLASSES]
    probs = out[:B, NPAD:NPAD + NUM_CLASSES]
    return logits, probs


def init_params(key):
    """Deterministic init mimicking nn.Linear's default U(-1/sqrt(fan_in), +)."""
    def linear(key, fan_in, fan_out):
        kw, kb = jax.random.split(key)
        bound = 1.0 / jnp.sqrt(fan_in)
        # stored as (in, out) so kernel computes x @ W
        w = jax.random.uniform(kw, (fan_in, fan_out), jnp.float32, -bound, bound)
        b = jax.random.uniform(kb, (1, fan_out), jnp.float32, -bound, bound)
        return w, b

    k1, k2, k3 = jax.random.split(key, 3)
    w1, b1 = linear(k1, 784, 200)
    w2, b2 = linear(k2, 200, 100)
    w3, b3 = linear(k3, 100, 10)
    return (w1, b1, w2, b2, w3, b3)


if __name__ == "__main__":
    key = jax.random.PRNGKey(0)
    kx, kp = jax.random.split(key)

    # small batch of MNIST-shaped inputs, NCHW like PyTorch
    B = 8
    x = jax.random.normal(kx, (B, 1, 28, 28), jnp.float32)
    params = init_params(kp)

    logits, probs = fc_nn_forward(x, params)
    jax.block_until_ready((logits, probs))

    # pure-JAX reference using the SAME bf16 weight/activation casts (f32 accum)
    w1, b1, w2, b2, w3, b3 = params
    xf = x.reshape(B, 784).astype(jnp.bfloat16)
    h1 = jnp.maximum(
        jnp.dot(xf, w1.astype(jnp.bfloat16), preferred_element_type=jnp.float32) + b1, 0.0)
    h2 = jnp.maximum(
        jnp.dot(h1.astype(jnp.bfloat16), w2.astype(jnp.bfloat16),
                preferred_element_type=jnp.float32) + b2, 0.0)
    ref_logits = jnp.dot(h2.astype(jnp.bfloat16), w3.astype(jnp.bfloat16),
                         preferred_element_type=jnp.float32) + b3
    ref_probs = jax.nn.softmax(ref_logits, axis=-1)

    assert logits.shape == (B, NUM_CLASSES) and probs.shape == (B, NUM_CLASSES)
    assert jnp.allclose(logits, ref_logits, atol=1e-2, rtol=1e-2), \
        float(jnp.max(jnp.abs(logits - ref_logits)))
    # approx reciprocal in softmax => ~2^-12 relative error on probs
    assert jnp.allclose(probs, ref_probs, atol=2e-3, rtol=1e-2), \
        float(jnp.max(jnp.abs(probs - ref_probs)))

    print("KERNEL_OK")
</pallas_src>

<mosaic_0001>
module attributes {stable_mosaic.version = 11 : i64} {
  func.func @fcnn_kernel(%arg0: i32, %arg1: memref<8x784xbf16, #tpu.memory_space<vmem>>, %arg2: memref<784x256xbf16, #tpu.memory_space<vmem>>, %arg3: memref<1x256xf32, #tpu.memory_space<vmem>>, %arg4: memref<256x128xbf16, #tpu.memory_space<vmem>>, %arg5: memref<1x128xf32, #tpu.memory_space<vmem>>, %arg6: memref<128x128xbf16, #tpu.memory_space<vmem>>, %arg7: memref<1x128xf32, #tpu.memory_space<vmem>>, %arg8: memref<8x256xf32, #tpu.memory_space<vmem>>) attributes {dimension_semantics = [#tpu.dimension_semantics<parallel>], iteration_bounds = array<i64: 1>, scalar_prefetch = 0 : i64, scratch_operands = 0 : i64, tpu.core_type = #tpu.core_type<tc>, window_params = [{transform_indices = @transform_0, window_bounds = array<i64: 8, 784>}, {pipeline_mode = #tpu.pipeline_mode<synchronous>, transform_indices = @transform_1, window_bounds = array<i64: 784, 256>}, {pipeline_mode = #tpu.pipeline_mode<synchronous>, transform_indices = @transform_2, window_bounds = array<i64: 1, 256>}, {pipeline_mode = #tpu.pipeline_mode<synchronous>, transform_indices = @transform_3, window_bounds = array<i64: 256, 128>}, {pipeline_mode = #tpu.pipeline_mode<synchronous>, transform_indices = @transform_4, window_bounds = array<i64: 1, 128>}, {pipeline_mode = #tpu.pipeline_mode<synchronous>, transform_indices = @transform_5, window_bounds = array<i64: 128, 128>}, {pipeline_mode = #tpu.pipeline_mode<synchronous>, transform_indices = @transform_6, window_bounds = array<i64: 1, 128>}, {transform_indices = @transform_7, window_bounds = array<i64: 8, 256>}]} {
    %c0 = arith.constant 0 : index
    %c0_0 = arith.constant 0 : index
    %0 = vector.load %arg1[%c0, %c0_0] : memref<8x784xbf16, #tpu.memory_space<vmem>>, vector<8x784xbf16>
    %c0_1 = arith.constant 0 : index
    %c0_2 = arith.constant 0 : index
    %1 = vector.load %arg2[%c0_1, %c0_2] : memref<784x256xbf16, #tpu.memory_space<vmem>>, vector<784x256xbf16>
    %cst = arith.constant dense<0.000000e+00> : vector<8x256xf32>
    %2 = tpu.matmul %0, %1, %cst {dimension_numbers = #tpu.dot_dimension_numbers<[1], [0], [0], [1], [0, 0, 1, 1], [], []>} : vector<8x784xbf16>, vector<784x256xbf16>, vector<8x256xf32> -> vector<8x256xf32>
    %c0_3 = arith.constant 0 : index
    %c0_4 = arith.constant 0 : index
    %3 = vector.load %arg3[%c0_3, %c0_4] : memref<1x256xf32, #tpu.memory_space<vmem>>, vector<1x256xf32>
    %4 = vector.broadcast %3 : vector<1x256xf32> to vector<8x256xf32>
    %5 = arith.addf %2, %4 : vector<8x256xf32>
    %cst_5 = arith.constant 0.000000e+00 : f32
    %6 = vector.broadcast %cst_5 : f32 to vector<8x256xf32>
    %7 = arith.maximumf %5, %6 : vector<8x256xf32>
    %8 = arith.truncf %7 : vector<8x256xf32> to vector<8x256xbf16>
    %c0_6 = arith.constant 0 : index
    %c0_7 = arith.constant 0 : index
    %9 = vector.load %arg4[%c0_6, %c0_7] : memref<256x128xbf16, #tpu.memory_space<vmem>>, vector<256x128xbf16>
    %cst_8 = arith.constant dense<0.000000e+00> : vector<8x128xf32>
    %10 = tpu.matmul %8, %9, %cst_8 {dimension_numbers = #tpu.dot_dimension_numbers<[1], [0], [0], [1], [0, 0, 1, 1], [], []>} : vector<8x256xbf16>, vector<256x128xbf16>, vector<8x128xf32> -> vector<8x128xf32>
    %c0_9 = arith.constant 0 : index
    %c0_10 = arith.constant 0 : index
    %11 = vector.load %arg5[%c0_9, %c0_10] : memref<1x128xf32, #tpu.memory_space<vmem>>, vector<1x128xf32>
    %12 = vector.broadcast %11 : vector<1x128xf32> to vector<8x128xf32>
    %13 = arith.addf %10, %12 : vector<8x128xf32>
    %cst_11 = arith.constant 0.000000e+00 : f32
    %14 = vector.broadcast %cst_11 : f32 to vector<8x128xf32>
    %15 = arith.maximumf %13, %14 : vector<8x128xf32>
    %16 = arith.truncf %15 : vector<8x128xf32> to vector<8x128xbf16>
    %c0_12 = arith.constant 0 : index
    %c0_13 = arith.constant 0 : index
    %17 = vector.load %arg6[%c0_12, %c0_13] : memref<128x128xbf16, #tpu.memory_space<vmem>>, vector<128x128xbf16>
    %cst_14 = arith.constant dense<0.000000e+00> : vector<8x128xf32>
    %18 = tpu.matmul %16, %17, %cst_14 {dimension_numbers = #tpu.dot_dimension_numbers<[1], [0], [0], [1], [0, 0, 1, 1], [], []>} : vector<8x128xbf16>, vector<128x128xbf16>, vector<8x128xf32> -> vector<8x128xf32>
    %c0_15 = arith.constant 0 : index
    %c0_16 = arith.constant 0 : index
    %19 = vector.load %arg7[%c0_15, %c0_16] : memref<1x128xf32, #tpu.memory_space<vmem>>, vector<1x128xf32>
    %20 = vector.broadcast %19 : vector<1x128xf32> to vector<8x128xf32>
    %21 = arith.addf %18, %20 : vector<8x128xf32>
    %22 = tpu.iota {dimensions = array<i32: 1>} : vector<8x128xi32>
    %c10_i32 = arith.constant 10 : i32
    %23 = vector.broadcast %c10_i32 : i32 to vector<8x128xi32>
    %24 = arith.cmpi slt, %22, %23 : vector<8x128xi32>
    %cst_17 = arith.constant -1.000000e+30 : f32
    %25 = vector.broadcast %cst_17 : f32 to vector<8x128xf32>
    %26 = arith.select %24, %21, %25 : vector<8x128xi1>, vector<8x128xf32>
    %cst_18 = arith.constant dense<0xFF800000> : vector<8xf32>
    %27 = vector.multi_reduction <maximumf>, %26, %cst_18 [1] : vector<8x128xf32> to vector<8xf32>
    %28 = vector.shape_cast %27 : vector<8xf32> to vector<8x1xf32>
    %29 = vector.broadcast %28 : vector<8x1xf32> to vector<8x128xf32>
    %30 = arith.subf %26, %29 : vector<8x128xf32>
    %31 = math.exp %30 : vector<8x128xf32>
    %cst_19 = arith.constant dense<0.000000e+00> : vector<8xf32>
    %32 = vector.multi_reduction <add>, %31, %cst_19 [1] : vector<8x128xf32> to vector<8xf32>
    %33 = vector.shape_cast %32 : vector<8xf32> to vector<8x1xf32>
    %34 = tpu.reciprocal %33 {approx = true} : vector<8x1xf32> -> vector<8x1xf32>
    %35 = vector.broadcast %34 : vector<8x1xf32> to vector<8x128xf32>
    %36 = arith.mulf %31, %35 : vector<8x128xf32>
    %c0_20 = arith.constant 0 : index
    %c0_21 = arith.constant 0 : index
    %37 = vector.load %arg8[%c0_20, %c0_21] : memref<8x256xf32, #tpu.memory_space<vmem>>, vector<8x128xf32>
    tpu.vector_store %arg8[%c0_20, %c0_21], %21 {strides = array<i32>} : memref<8x256xf32, #tpu.memory_space<vmem>>, vector<8x128xf32>,
    %c0_22 = arith.constant 0 : index
    %c128 = arith.constant 128 : index
    %38 = vector.load %arg8[%c0_22, %c128] : memref<8x256xf32, #tpu.memory_space<vmem>>, vector<8x128xf32>
    tpu.vector_store %arg8[%c0_22, %c128], %36 {strides = array<i32>} : memref<8x256xf32, #tpu.memory_space<vmem>>, vector<8x128xf32>,
    return
  }
  func.func @transform_0(%arg0: i32) -> (i32, i32) {
    %c0_i32 = arith.constant 0 : i32
    %c0_i32_0 = arith.constant 0 : i32
    return %arg0, %c0_i32 : i32, i32
  }
  func.func @transform_1(%arg0: i32) -> (i32, i32) {
    %c0_i32 = arith.constant 0 : i32
    %c0_i32_0 = arith.constant 0 : i32
    %c0_i32_1 = arith.constant 0 : i32
    return %c0_i32, %c0_i32_0 : i32, i32
  }
  func.func @transform_2(%arg0: i32) -> (i32, i32) {
    %c0_i32 = arith.constant 0 : i32
    %c0_i32_0 = arith.constant 0 : i32
    %c0_i32_1 = arith.constant 0 : i32
    return %c0_i32, %c0_i32_0 : i32, i32
  }
  func.func @transform_3(%arg0: i32) -> (i32, i32) {
    %c0_i32 = arith.constant 0 : i32
    %c0_i32_0 = arith.constant 0 : i32
    %c0_i32_1 = arith.constant 0 : i32
    return %c0_i32, %c0_i32_0 : i32, i32
  }
  func.func @transform_4(%arg0: i32) -> (i32, i32) {
    %c0_i32 = arith.constant 0 : i32
    %c0_i32_0 = arith.constant 0 : i32
    %c0_i32_1 = arith.constant 0 : i32
    return %c0_i32, %c0_i32_0 : i32, i32
  }
  func.func @transform_5(%arg0: i32) -> (i32, i32) {
    %c0_i32 = arith.constant 0 : i32
    %c0_i32_0 = arith.constant 0 : i32
    %c0_i32_1 = arith.constant 0 : i32
    return %c0_i32, %c0_i32_0 : i32, i32
  }
  func.func @transform_6(%arg0: i32) -> (i32, i32) {
    %c0_i32 = arith.constant 0 : i32
    %c0_i32_0 = arith.constant 0 : i32
    %c0_i32_1 = arith.constant 0 : i32
    return %c0_i32, %c0_i32_0 : i32, i32
  }
  func.func @transform_7(%arg0: i32) -> (i32, i32) {
    %c0_i32 = arith.constant 0 : i32
    %c0_i32_0 = arith.constant 0 : i32
    return %arg0, %c0_i32 : i32, i32
  }
}

</mosaic_0001>

<bundles_post_ra>
// kernel: fc_nn_forward.1
= control target key start
LH: loop header
LB: loop body
LE: loop exit
PB: predicated region body
PF: predicated region fallthrough
CT: control target
= control target key end

     0   :  { %vm649_vm0 = vcmask 130048   ;;  %s2474_s1 = inlined_call_operand.vmem [shape: bf16[784,256], index: 1, kind: input, shape index: {}]   ;;  %s2475_s0 = inlined_call_operand.vmem [shape: bf16[8,784], index: 0, kind: input, shape index: {}]   ;;  %s2476_s4 = inlined_call_operand.vmem [shape: f32[1,128], index: 4, kind: input, shape index: {}]   ;;  %s2477_s3 = inlined_call_operand.vmem [shape: bf16[256,128], index: 3, kind: input, shape index: {}]   ;;  %s2478_s2 = inlined_call_operand.vmem [shape: f32[1,256], index: 2, kind: input, shape index: {}]   ;;  %s2479_s6 = inlined_call_operand.vmem [shape: f32[1,128], index: 6, kind: input, shape index: {}]   ;;  %s2480_s5 = inlined_call_operand.vmem [shape: bf16[128,128], index: 5, kind: input, shape index: {}]   ;;  %s2481_s7 = inlined_call_operand.vmem [shape: f32[8,256], index: 7, kind: output, shape index: {}]  }
   0x1   :  { %v1157_v0 = vld [vmem:[%s2474_s1 + $0x70] sm:$0xf]  ;;  %v1604_v1 = vld [vmem:[%s2474_s1 + $0x74] sm:$0xf0]  ;;  %v1149_v11 = vld [vmem:[%s2474_s1 + $0x60] sm:$0xf] }
   0x2   :  { %v1285_v2 = vld [vmem:[%s2474_s1 + $0x170] sm:$0xf]  ;;  %v1158_v3 = vor.u32 %v1604_v1, %v1157_v0  ;;  %v1636_v4 = vld [vmem:[%s2474_s1 + $0x174] sm:$0xf0]  ;;  %v1602_v13 = vld [vmem:[%s2474_s1 + $0x64] sm:$0xf0] }
   0x3   :  { %v1349_v5 = vld [vmem:[%s2474_s1 + $0x1f0] sm:$0xf]  ;;  %v1652_v6 = vld [vmem:[%s2474_s1 + $0x1f4] sm:$0xf0]  ;;  %v1286_v7 = vor.u32 %v1636_v4, %v1285_v2  ;;  %v1277_v14 = vld [vmem:[%s2474_s1 + $0x160] sm:$0xf]  ;;  %v1150_v16 = vor.u32 %v1602_v13, %v1149_v11 }
   0x4   :  { %v1350_v8 = vor.u32 %v1652_v6, %v1349_v5  ;;  %v1221_v9 = vld [vmem:[%s2474_s1 + $0xf0] sm:$0xf]  ;;  %v1620_v10 = vld [vmem:[%s2474_s1 + $0xf4] sm:$0xf0]  ;;  %653 = vmatpush.bf16.msra.mxu0 %v1158_v3  ;;  %v1634_v15 = vld [vmem:[%s2474_s1 + $0x164] sm:$0xf0] }
   0x5   :  { %v1222_v12 = vor.u32 %v1620_v10, %v1221_v9  ;;  %679 = vmatpush.bf16.msra.mxu2 %v1286_v7  ;;  %v1278_v17 = vor.u32 %v1634_v15, %v1277_v14  ;;  %v1341_v18 = vld [vmem:[%s2474_s1 + $0x1e0] sm:$0xf]  ;;  %v1650_v19 = vld [vmem:[%s2474_s1 + $0x1e4] sm:$0xf0]  ;;  %v1141_v23 = vld [vmem:[%s2474_s1 + $0x50] sm:$0xf] }
   0x6   :  { %692 = vmatpush.bf16.msra.mxu3 %v1350_v8  ;;  %v1213_v20 = vld [vmem:[%s2474_s1 + $0xe0] sm:$0xf]  ;;  %v1342_v21 = vor.u32 %v1650_v19, %v1341_v18  ;;  %v1618_v22 = vld [vmem:[%s2474_s1 + $0xe4] sm:$0xf0]  ;;  %v1600_v24 = vld [vmem:[%s2474_s1 + $0x54] sm:$0xf0] }
   0x7   :  { %666 = vmatpush.bf16.msra.mxu1 %v1222_v12  ;;  %v1214_v25 = vor.u32 %v1618_v22, %v1213_v20  ;;  %v1269_v26 = vld [vmem:[%s2474_s1 + $0x150] sm:$0xf]  ;;  %v1632_v27 = vld [vmem:[%s2474_s1 + $0x154] sm:$0xf0]  ;;  %v1142_v29 = vor.u32 %v1600_v24, %v1141_v23  ;;  %v1133_v35 = vld [vmem:[%s2474_s1 + $0x40] sm:$0xf] }
   0x8   :  { %v1333_v28 = vld [vmem:[%s2474_s1 + $0x1d0] sm:$0xf]  ;;  %654 = vmatpush.bf16.msra.mxu0 %v1150_v16  ;;  %v1648_v30 = vld [vmem:[%s2474_s1 + $0x1d4] sm:$0xf0]  ;;  %v1270_v33 = vor.u32 %v1632_v27, %v1269_v26  ;;  %v1598_v36 = vld [vmem:[%s2474_s1 + $0x44] sm:$0xf0] }
   0x9   :  { %v1205_v31 = vld [vmem:[%s2474_s1 + $0xd0] sm:$0xf]  ;;  %v1616_v32 = vld [vmem:[%s2474_s1 + $0xd4] sm:$0xf0]  ;;  %680 = vmatpush.bf16.msra.mxu2 %v1278_v17  ;;  %v1334_v34 = vor.u32 %v1648_v30, %v1333_v28  ;;  %v1261_v37 = vld [vmem:[%s2474_s1 + $0x140] sm:$0xf]  ;;  %v1134_v44 = vor.u32 %v1598_v36, %v1133_v35 }
   0xa   :  { %693 = vmatpush.bf16.msra.mxu3 %v1342_v21  ;;  %v1206_v38 = vor.u32 %v1616_v32, %v1205_v31  ;;  %v1630_v39 = vld [vmem:[%s2474_s1 + $0x144] sm:$0xf0]  ;;  %v1325_v40 = vld [vmem:[%s2474_s1 + $0x1c0] sm:$0xf]  ;;  %v1125_v47 = vld [vmem:[%s2474_s1 + $0x30] sm:$0xf] }
   0xb   :  { %667 = vmatpush.bf16.msra.mxu1 %v1214_v25  ;;  %v1646_v41 = vld [vmem:[%s2474_s1 + $0x1c4] sm:$0xf0]  ;;  %v1197_v42 = vld [vmem:[%s2474_s1 + $0xc0] sm:$0xf]  ;;  %v1262_v45 = vor.u32 %v1630_v39, %v1261_v37  ;;  %v1596_v48 = vld [vmem:[%s2474_s1 + $0x34] sm:$0xf0] }
   0xc   :  { %v1614_v43 = vld [vmem:[%s2474_s1 + $0xc4] sm:$0xf0]  ;;  %655 = vmatpush.bf16.msra.mxu0 %v1142_v29  ;;  %v1326_v46 = vor.u32 %v1646_v41, %v1325_v40  ;;  %v1253_v49 = vld [vmem:[%s2474_s1 + $0x130] sm:$0xf]  ;;  %v1628_v51 = vld [vmem:[%s2474_s1 + $0x134] sm:$0xf0]  ;;  %v1126_v56 = vor.u32 %v1596_v48, %v1125_v47 }
   0xd   :  { %681 = vmatpush.bf16.msra.mxu2 %v1270_v33  ;;  %v1198_v50 = vor.u32 %v1614_v43, %v1197_v42  ;;  %v1317_v52 = vld [vmem:[%s2474_s1 + $0x1b0] sm:$0xf]  ;;  %v1644_v53 = vld [vmem:[%s2474_s1 + $0x1b4] sm:$0xf0]  ;;  %v1254_v57 = vor.u32 %v1628_v51, %v1253_v49  ;;  %v1117_v59 = vld [vmem:[%s2474_s1 + $0x20] sm:$0xf] }
   0xe   :  { %694 = vmatpush.bf16.msra.mxu3 %v1334_v34  ;;  %v1189_v54 = vld [vmem:[%s2474_s1 + $0xb0] sm:$0xf]  ;;  %v1612_v55 = vld [vmem:[%s2474_s1 + $0xb4] sm:$0xf0]  ;;  %v1318_v58 = vor.u32 %v1644_v53, %v1317_v52  ;;  %v1594_v60 = vld [vmem:[%s2474_s1 + $0x24] sm:$0xf0] }
   0xf   :  { %668 = vmatpush.bf16.msra.mxu1 %v1206_v38  ;;  %v1245_v61 = vld [vmem:[%s2474_s1 + $0x120] sm:$0xf]  ;;  %v1190_v62 = vor.u32 %v1612_v55, %v1189_v54  ;;  %v1626_v63 = vld [vmem:[%s2474_s1 + $0x124] sm:$0xf0]  ;;  %v1118_v4 = vor.u32 %v1594_v60, %v1117_v59  ;;  %v1109_v7 = vld [vmem:[%s2474_s1 + $0x10] sm:$0xf] }
  0x10   :  { %656 = vmatpush.bf16.msra.mxu0 %v1134_v44  ;;  %v1309_v0 = vld [vmem:[%s2474_s1 + $0x1a0] sm:$0xf]  ;;  %v1642_v1 = vld [vmem:[%s2474_s1 + $0x1a4] sm:$0xf0]  ;;  %v1246_v5 = vor.u32 %v1626_v63, %v1245_v61  ;;  %v1592_v8 = vld [vmem:[%s2474_s1 + $0x14] sm:$0xf0] }
  0x11   :  { %682 = vmatpush.bf16.msra.mxu2 %v1262_v45  ;;  %v1181_v2 = vld [vmem:[%s2474_s1 + $0xa0] sm:$0xf]  ;;  %v1610_v3 = vld [vmem:[%s2474_s1 + $0xa4] sm:$0xf0]  ;;  %v1310_v6 = vor.u32 %v1642_v1, %v1309_v0  ;;  %v1237_v9 = vld [vmem:[%s2474_s1 + $0x110] sm:$0xf]  ;;  %v1110_v17 = vor.u32 %v1592_v8, %v1109_v7 }
  0x12   :  { %695 = vmatpush.bf16.msra.mxu3 %v1326_v46  ;;  %v1182_v10 = vor.u32 %v1610_v3, %v1181_v2  ;;  %v1624_v11 = vld [vmem:[%s2474_s1 + $0x114] sm:$0xf0]  ;;  %v1301_v12 = vld [vmem:[%s2474_s1 + $0x190] sm:$0xf]  ;;  %v1101_v16 = vld [vmem:[%s2474_s1] sm:$0xf] }
  0x13   :  { %669 = vmatpush.bf16.msra.mxu1 %v1198_v50  ;;  %v1640_v13 = vld [vmem:[%s2474_s1 + $0x194] sm:$0xf0]  ;;  %v1173_v14 = vld [vmem:[%s2474_s1 + $0x90] sm:$0xf]  ;;  %v1590_v18 = vld [vmem:[%s2474_s1 + $0x4] sm:$0xf0]  ;;  %v1238_v21 = vor.u32 %v1624_v11, %v1237_v9 }
  0x14   :  { %657 = vmatpush.bf16.msra.mxu0 %v1126_v56  ;;  %v1608_v15 = vld [vmem:[%s2474_s1 + $0x94] sm:$0xf0]  ;;  %v1229_v19 = vld [vmem:[%s2474_s1 + $0x100] sm:$0xf]  ;;  %v1622_v20 = vld [vmem:[%s2474_s1 + $0x104] sm:$0xf0]  ;;  %v1302_v22 = vor.u32 %v1640_v13, %v1301_v12  ;;  %v1102_v33 = vor.u32 %v1590_v18, %v1101_v16 }
  0x15   :  { %683 = vmatpush.bf16.msra.mxu2 %v1254_v57  ;;  %v1293_v23 = vld [vmem:[%s2474_s1 + $0x180] sm:$0xf]  ;;  %v1638_v24 = vld [vmem:[%s2474_s1 + $0x184] sm:$0xf0]  ;;  %v1174_v26 = vor.u32 %v1608_v15, %v1173_v14  ;;  %v1413_v27 = vld [vmem:[%s2474_s1 + $0x270] sm:$0xf]  ;;  %v1230_v38 = vor.u32 %v1622_v20, %v1229_v19 }
  0x16   :  { %696 = vmatpush.bf16.msra.mxu3 %v1318_v58  ;;  %v28_v25 = vld [vmem:[%s2475_s0 + $0x8] sm:$0xff]  ;;  %v1668_v28 = vld [vmem:[%s2474_s1 + $0x274] sm:$0xf0]  ;;  %v1603_v29 = vld [vmem:[%s2474_s1 + $0x74] sm:$0xf]  ;;  %v1294_v39 = vor.u32 %v1638_v24, %v1293_v23 }
  0x17   :  { %670 = vmatpush.bf16.msra.mxu1 %v1190_v62  ;;  %v1159_v30 = vld [vmem:[%s2474_s1 + $0x78] sm:$0xf0]  ;;  %v1165_v31 = vld [vmem:[%s2474_s1 + $0x80] sm:$0xf]  ;;  %v1606_v34 = vld [vmem:[%s2474_s1 + $0x84] sm:$0xf0]  ;;  %v141_v35 = vunpack.c.l.b16 %v28_v25  ;;  %v1414_v43 = vor.u32 %v1668_v28, %v1413_v27  ;;  %v142_v53 = vunpack.c.h.b16 %v28_v25 }
  0x18   :  { %658 = vmatpush.bf16.msra.mxu0 %v1118_v4  ;;  %v27_v32 = vld [vmem:[%s2475_s0] sm:$0xff]  ;;  %v1686_v37 = vld [vmem:[%s2474_s1 + $0x304] sm:$0xf0]  ;;  %v1477_v40 = vld [vmem:[%s2474_s1 + $0x2f0] sm:$0xf]  ;;  %v1162_v44 = vor.u32 %v1603_v29, %v1159_v30  ;;  %v1166_v48 = vor.u32 %v1606_v34, %v1165_v31 }
  0x19   :  { %684 = vmatpush.bf16.msra.mxu2 %v1246_v5  ;;  %v1485_v36 = vld [vmem:[%s2474_s1 + $0x300] sm:$0xf]  ;;  %v1684_v41 = vld [vmem:[%s2474_s1 + $0x2f4] sm:$0xf0]  ;;  %v139_v42 = vunpack.c.l.b16 %v27_v32  ;;  %v1619_v45 = vld [vmem:[%s2474_s1 + $0xf4] sm:$0xf]  ;;  %v140_v54 = vunpack.c.h.b16 %v27_v32  ;;  %v1997_v55 = vpack.c.b16 %v141_v35, %v141_v35  ;;  %v2016_v2 = vpack.c.b16 %v142_v53, %v142_v53 }
  0x1a   :  { %697 = vmatpush.bf16.msra.mxu3 %v1310_v6  ;;  %v1223_v46 = vld [vmem:[%s2474_s1 + $0xf8] sm:$0xf0]  ;;  %v1405_v47 = vld [vmem:[%s2474_s1 + $0x260] sm:$0xf]  ;;  %v1486_v49 = vor.u32 %v1686_v37, %v1485_v36  ;;  %v1666_v50 = vld [vmem:[%s2474_s1 + $0x264] sm:$0xf0]  ;;  %v1478_v56 = vor.u32 %v1684_v41, %v1477_v40 }
  0x1b   :  { %671 = vmatpush.bf16.msra.mxu1 %v1182_v10  ;;  %v1601_v51 = vld [vmem:[%s2474_s1 + $0x64] sm:$0xf]  ;;  %v1151_v52 = vld [vmem:[%s2474_s1 + $0x68] sm:$0xf0]  ;;  %v1226_v57 = vor.u32 %v1619_v45, %v1223_v46  ;;  %v1999_v58 = vpack.c.b16 %v139_v42, %v139_v42  ;;  %v1469_v59 = vld [vmem:[%s2474_s1 + $0x2e0] sm:$0xf]  ;;  %v1406_v61 = vor.u32 %v1666_v50, %v1405_v47  ;;  %v2018_v3 = vpack.c.b16 %v140_v54, %v140_v54 }
  0x1c   :  { %659 = vmatpush.bf16.msra.mxu0 %v1110_v17  ;;  %v1682_v60 = vld [vmem:[%s2474_s1 + $0x2e4] sm:$0xf0]  ;;  %v1154_v62 = vor.u32 %v1601_v51, %v1151_v52  ;;  %v1617_v63 = vld [vmem:[%s2474_s1 + $0xe4] sm:$0xf]  ;;  %v1215_v0 = vld [vmem:[%s2474_s1 + $0xe8] sm:$0xf0] }
  0x1d   :  { %685 = vmatpush.bf16.msra.mxu2 %v1238_v21  ;;  %v1397_v1 = vld [vmem:[%s2474_s1 + $0x250] sm:$0xf]  ;;  %v1664_v4 = vld [vmem:[%s2474_s1 + $0x254] sm:$0xf0]  ;;  %v1599_v5 = vld [vmem:[%s2474_s1 + $0x54] sm:$0xf]  ;;  %v1470_v7 = vor.u32 %v1682_v60, %v1469_v59  ;;  %v1218_v8 = vor.u32 %v1617_v63, %v1215_v0 }
  0x1e   :  { %698 = vmatpush.bf16.msra.mxu3 %v1302_v22  ;;  %v1143_v6 = vld [vmem:[%s2474_s1 + $0x58] sm:$0xf0]  ;;  %v1461_v9 = vld [vmem:[%s2474_s1 + $0x2d0] sm:$0xf]  ;;  %v1680_v10 = vld [vmem:[%s2474_s1 + $0x2d4] sm:$0xf0]  ;;  %v1398_v11 = vor.u32 %v1664_v4, %v1397_v1 }
  0x1f   :  { %672 = vmatpush.bf16.msra.mxu1 %v1174_v26  ;;  %v1146_v12 = vor.u32 %v1599_v5, %v1143_v6  ;;  %v1615_v13 = vld [vmem:[%s2474_s1 + $0xd4] sm:$0xf]  ;;  %v1207_v14 = vld [vmem:[%s2474_s1 + $0xd8] sm:$0xf0]  ;;  %v1389_v15 = vld [vmem:[%s2474_s1 + $0x240] sm:$0xf]  ;;  %v1462_v19 = vor.u32 %v1680_v10, %v1461_v9 }
  0x20   :  { %660 = vmatpush.bf16.msra.mxu0 %v1102_v33  ;;  %v1662_v16 = vld [vmem:[%s2474_s1 + $0x244] sm:$0xf0]  ;;  %v1597_v17 = vld [vmem:[%s2474_s1 + $0x44] sm:$0xf]  ;;  %v1135_v18 = vld [vmem:[%s2474_s1 + $0x48] sm:$0xf0]  ;;  %v1210_v20 = vor.u32 %v1615_v13, %v1207_v14 }
  0x21   :  { %686 = vmatpush.bf16.msra.mxu2 %v1230_v38  ;;  %v1453_v21 = vld [vmem:[%s2474_s1 + $0x2c0] sm:$0xf]  ;;  %v1678_v22 = vld [vmem:[%s2474_s1 + $0x2c4] sm:$0xf0]  ;;  %v30_v23 = vld [vmem:[%s2475_s0 + $0x18] sm:$0xf]  ;;  %v1390_v24 = vor.u32 %v1662_v16, %v1389_v15  ;;  %v1138_v25 = vor.u32 %v1597_v17, %v1135_v18 }
  0x22   :  { %699 = vmatpush.bf16.msra.mxu3 %v1294_v39  ;;  %v1613_v26 = vld [vmem:[%s2474_s1 + $0xc4] sm:$0xf]  ;;  %v1199_v27 = vld [vmem:[%s2474_s1 + $0xc8] sm:$0xf0]  ;;  %v1381_v28 = vld [vmem:[%s2474_s1 + $0x230] sm:$0xf]  ;;  %v1454_v32 = vor.u32 %v1678_v22, %v1453_v21  ;;  %v145_v33 = vunpack.c.l.b16 %v30_v23 }
  0x23   :  { %673 = vmatpush.bf16.msra.mxu1 %v1166_v48  ;;  %661 = vmatmul.bf16.vlgmr.msra.gmra.mxu0 %v1999_v58  ;;  %v1660_v29 = vld [vmem:[%s2474_s1 + $0x234] sm:$0xf0]  ;;  %v1595_v30 = vld [vmem:[%s2474_s1 + $0x34] sm:$0xf]  ;;  %v1127_v31 = vld [vmem:[%s2474_s1 + $0x38] sm:$0xf0]  ;;  %v1202_v34 = vor.u32 %v1613_v26, %v1199_v27 }
  0x24   :  { %705 = vmatpush.bf16.msrb.mxu0 %v1414_v43  ;;  %687 = vmatmul.bf16.vlgmr.msra.gmra.mxu2 %v1997_v55  ;;  %v1445_v35 = vld [vmem:[%s2474_s1 + $0x2b0] sm:$0xf]  ;;  %v1676_v36 = vld [vmem:[%s2474_s1 + $0x2b4] sm:$0xf0]  ;;  %v1382_v37 = vor.u32 %v1660_v29, %v1381_v28  ;;  %v1130_v38 = vor.u32 %v1595_v30, %v1127_v31  ;;  %v1611_v39 = vld [vmem:[%s2474_s1 + $0xb4] sm:$0xf]  ;;  %v2108_v46 = vpack.c.b16 %v145_v33, %v145_v33 }
  0x25   :  { %738 = vmatpush.bf16.msrb.mxu2 %v1486_v49  ;;  %700 = vmatmul.bf16.vlgmr.msra.gmra.mxu3 %v2016_v2  ;;  %v1191_v40 = vld [vmem:[%s2474_s1 + $0xb8] sm:$0xf0]  ;;  %v1373_v41 = vld [vmem:[%s2474_s1 + $0x220] sm:$0xf]  ;;  %v1658_v42 = vld [vmem:[%s2474_s1 + $0x224] sm:$0xf0]  ;;  %v1446_v45 = vor.u32 %v1676_v36, %v1445_v35 }
  0x26   :  { %744 = vmatpush.bf16.msrb.mxu3 %v1162_v44  ;;  %674 = vmatmul.bf16.vlgmr.msra.gmra.mxu1 %v2018_v3  ;;  %v1593_v43 = vld [vmem:[%s2474_s1 + $0x24] sm:$0xf]  ;;  %v1119_v44 = vld [vmem:[%s2474_s1 + $0x28] sm:$0xf0]  ;;  %v1194_v47 = vor.u32 %v1611_v39, %v1191_v40  ;;  %v1437_v48 = vld [vmem:[%s2474_s1 + $0x2a0] sm:$0xf]  ;;  %v1374_v50 = vor.u32 %v1658_v42, %v1373_v41 }
  0x27   :  { %718 = vmatpush.bf16.msrb.mxu1 %v1478_v56  ;;  %v1674_v49 = vld [vmem:[%s2474_s1 + $0x2a4] sm:$0xf0]  ;;  %v1122_v51 = vor.u32 %v1593_v43, %v1119_v44  ;;  %v1609_v52 = vld [vmem:[%s2474_s1 + $0xa4] sm:$0xf]  ;;  %v1183_v53 = vld [vmem:[%s2474_s1 + $0xa8] sm:$0xf0] }
  0x28   :  { %706 = vmatpush.bf16.msrb.mxu0 %v1406_v61  ;;  %v1365_v54 = vld [vmem:[%s2474_s1 + $0x210] sm:$0xf]  ;;  %v1656_v56 = vld [vmem:[%s2474_s1 + $0x214] sm:$0xf0]  ;;  %v1111_v59 = vld [vmem:[%s2474_s1 + $0x18] sm:$0xf0]  ;;  %v1438_v60 = vor.u32 %v1674_v49, %v1437_v48 }
  0x29   :  { %757 = vmatpush.bf16.msra.mxu2 %v1226_v57  ;;  %v1591_v57 = vld [vmem:[%s2474_s1 + $0x14] sm:$0xf]  ;;  %v1429_v61 = vld [vmem:[%s2474_s1 + $0x290] sm:$0xf]  ;;  %v1672_v63 = vld [vmem:[%s2474_s1 + $0x294] sm:$0xf0]  ;;  %v1366_v4 = vor.u32 %v1656_v56, %v1365_v54 }
  0x2a   :  { %745 = vmatpush.bf16.msrb.mxu3 %v1154_v62  ;;  %v1186_v62 = vor.u32 %v1609_v52, %v1183_v53  ;;  %v1607_v0 = vld [vmem:[%s2474_s1 + $0x94] sm:$0xf]  ;;  %v1175_v1 = vld [vmem:[%s2474_s1 + $0x98] sm:$0xf0]  ;;  %v1114_v5 = vor.u32 %v1591_v57, %v1111_v59  ;;  %v1357_v6 = vld [vmem:[%s2474_s1 + $0x200] sm:$0xf] }
  0x2b   :  { %719 = vmatpush.bf16.msrb.mxu1 %v1470_v7  ;;  %v1654_v7 = vld [vmem:[%s2474_s1 + $0x204] sm:$0xf0]  ;;  %v1589_v9 = vld [vmem:[%s2474_s1 + $0x4] sm:$0xf]  ;;  %v1103_v10 = vld [vmem:[%s2474_s1 + $0x8] sm:$0xf0]  ;;  %v1178_v16 = vor.u32 %v1607_v0, %v1175_v1 }
  0x2c   :  { %707 = vmatpush.bf16.msrb.mxu0 %v1398_v11  ;;  %v1635_v11 = vld [vmem:[%s2474_s1 + $0x174] sm:$0xf]  ;;  %v1287_v13 = vld [vmem:[%s2474_s1 + $0x178] sm:$0xf0]  ;;  %v1421_v17 = vld [vmem:[%s2474_s1 + $0x280] sm:$0xf]  ;;  %v1106_v21 = vor.u32 %v1589_v9, %v1103_v10 }
  0x2d   :  { %758 = vmatpush.bf16.msra.mxu2 %v1218_v8  ;;  %v29_v8 = vld [vmem:[%s2475_s0 + $0x10] sm:$0xff]  ;;  %v1415_v15 = vld [vmem:[%s2474_s1 + $0x278] sm:$0xf0]  ;;  %v1670_v18 = vld [vmem:[%s2474_s1 + $0x284] sm:$0xf0] }
  0x2e   :  { %746 = vmatpush.bf16.msrb.mxu3 %v1146_v12  ;;  %v1430_v12 = vor.u32 %v1672_v63, %v1429_v61  ;;  %v1667_v14 = vld [vmem:[%s2474_s1 + $0x274] sm:$0xf]  ;;  %v1605_v22 = vld [vmem:[%s2474_s1 + $0x84] sm:$0xf]  ;;  %v1167_v23 = vld [vmem:[%s2474_s1 + $0x88] sm:$0xf0]  ;;  %v144_v30 = vunpack.c.h.b16 %v29_v8  ;;  %v1422_v31 = vor.u32 %v1670_v18, %v1421_v17 }
  0x2f   :  { %720 = vmatpush.bf16.msrb.mxu1 %v1462_v19  ;;  %v143_v19 = vunpack.c.l.b16 %v29_v8  ;;  %v1418_v26 = vor.u32 %v1667_v14, %v1415_v15  ;;  %v1351_v27 = vld [vmem:[%s2474_s1 + $0x1f8] sm:$0xf0]  ;;  %v1683_v28 = vld [vmem:[%s2474_s1 + $0x2f4] sm:$0xf]  ;;  %v1279_v33 = vld [vmem:[%s2474_s1 + $0x168] sm:$0xf0]  ;;  %v1170_v35 = vor.u32 %v1605_v22, %v1167_v23 }
  0x30   :  { %708 = vmatpush.bf16.msrb.mxu0 %v1390_v24  ;;  %v1651_v24 = vld [vmem:[%s2474_s1 + $0x1f4] sm:$0xf]  ;;  %v1479_v29 = vld [vmem:[%s2474_s1 + $0x2f8] sm:$0xf0]  ;;  %v1665_v36 = vld [vmem:[%s2474_s1 + $0x264] sm:$0xf]  ;;  %v2216_v41 = vpack.c.b16 %v144_v30, %v144_v30 }
  0x31   :  { %759 = vmatpush.bf16.msra.mxu2 %v1210_v20  ;;  %v1358_v20 = vor.u32 %v1654_v7, %v1357_v6  ;;  %v1482_v39 = vor.u32 %v1683_v28, %v1479_v29  ;;  %v1649_v40 = vld [vmem:[%s2474_s1 + $0x1e4] sm:$0xf]  ;;  %v1343_v43 = vld [vmem:[%s2474_s1 + $0x1e8] sm:$0xf0]  ;;  %v1631_v48 = vld [vmem:[%s2474_s1 + $0x154] sm:$0xf] }
  0x32   :  { %747 = vmatpush.bf16.msrb.mxu3 %v1138_v25  ;;  %v1290_v25 = vor.u32 %v1635_v11, %v1287_v13  ;;  %v1681_v44 = vld [vmem:[%s2474_s1 + $0x2e4] sm:$0xf]  ;;  %v1271_v49 = vld [vmem:[%s2474_s1 + $0x158] sm:$0xf0]  ;;  %v1346_v52 = vor.u32 %v1649_v40, %v1343_v43  ;;  %v1647_v54 = vld [vmem:[%s2474_s1 + $0x1d4] sm:$0xf] }
  0x33   :  { %721 = vmatpush.bf16.msrb.mxu1 %v1454_v32  ;;  %v1633_v32 = vld [vmem:[%s2474_s1 + $0x164] sm:$0xf]  ;;  %v1274_v56 = vor.u32 %v1631_v48, %v1271_v49  ;;  %v1335_v57 = vld [vmem:[%s2474_s1 + $0x1d8] sm:$0xf0]  ;;  %v1679_v59 = vld [vmem:[%s2474_s1 + $0x2d4] sm:$0xf] }
  0x34   :  { %709 = vmatpush.bf16.msrb.mxu0 %v1382_v37  ;;  %1491 = vmatmul.msk.bf16.vlgmr.msrb.gmra.mxu2 %vm649_vm0, %v2108_v46  ;;  %v1407_v37 = vld [vmem:[%s2474_s1 + $0x268] sm:$0xf0]  ;;  %v1282_v42 = vor.u32 %v1633_v32, %v1279_v33  ;;  %v1661_v0 = vld [vmem:[%s2474_s1 + $0x244] sm:$0xf]  ;;  %v1627_v10 = vld [vmem:[%s2474_s1 + $0x134] sm:$0xf] }
  0x35   :  { %760 = vmatpush.bf16.msra.mxu2 %v1202_v34  ;;  %v2205_v34 = vpack.c.b16 %v143_v19, %v143_v19  ;;  %v1263_v63 = vld [vmem:[%s2474_s1 + $0x148] sm:$0xf0]  ;;  %v1677_v8 = vld [vmem:[%s2474_s1 + $0x2c4] sm:$0xf]  ;;  %v1255_v11 = vld [vmem:[%s2474_s1 + $0x138] sm:$0xf0] }
  0x36   :  { %748 = vmatpush.bf16.msrb.mxu3 %v1130_v38  ;;  %v1354_v38 = vor.u32 %v1651_v24, %v1351_v27  ;;  %v1391_v1 = vld [vmem:[%s2474_s1 + $0x248] sm:$0xf0]  ;;  %v1383_v13 = vld [vmem:[%s2474_s1 + $0x238] sm:$0xf0]  ;;  %v1258_v17 = vor.u32 %v1627_v10, %v1255_v11  ;;  %v1675_v19 = vld [vmem:[%s2474_s1 + $0x2b4] sm:$0xf] }
  0x37   :  { %722 = vmatpush.bf16.msrb.mxu1 %v1446_v45  ;;  %v1471_v45 = vld [vmem:[%s2474_s1 + $0x2e8] sm:$0xf0]  ;;  %v1394_v9 = vor.u32 %v1661_v0, %v1391_v1  ;;  %v1319_v18 = vld [vmem:[%s2474_s1 + $0x1b8] sm:$0xf0]  ;;  %v1625_v22 = vld [vmem:[%s2474_s1 + $0x124] sm:$0xf] }
  0x38   :  { %710 = vmatpush.bf16.msrb.mxu0 %v1374_v50  ;;  %v1663_v50 = vld [vmem:[%s2474_s1 + $0x254] sm:$0xf]  ;;  %v1474_v53 = vor.u32 %v1681_v44, %v1471_v45  ;;  %v1327_v7 = vld [vmem:[%s2474_s1 + $0x1c8] sm:$0xf0]  ;;  %v1657_v24 = vld [vmem:[%s2474_s1 + $0x224] sm:$0xf] }
  0x39   :  { %761 = vmatpush.bf16.msra.mxu2 %v1194_v47  ;;  %v1410_v47 = vor.u32 %v1665_v36, %v1407_v37  ;;  %v1247_v23 = vld [vmem:[%s2474_s1 + $0x128] sm:$0xf0]  ;;  %v1641_v28 = vld [vmem:[%s2474_s1 + $0x1a4] sm:$0xf]  ;;  %v1239_v36 = vld [vmem:[%s2474_s1 + $0x118] sm:$0xf0] }
  0x3a   :  { %749 = vmatpush.bf16.msrb.mxu3 %v1122_v51  ;;  %v1399_v51 = vld [vmem:[%s2474_s1 + $0x258] sm:$0xf0]  ;;  %v1250_v29 = vor.u32 %v1625_v22, %v1247_v23  ;;  %v1311_v30 = vld [vmem:[%s2474_s1 + $0x1a8] sm:$0xf0]  ;;  %v1655_v37 = vld [vmem:[%s2474_s1 + $0x214] sm:$0xf] }
  0x3b   :  { %723 = vmatpush.bf16.msrb.mxu1 %v1438_v60  ;;  %v1463_v60 = vld [vmem:[%s2474_s1 + $0x2d8] sm:$0xf0]  ;;  %v1402_v61 = vor.u32 %v1663_v50, %v1399_v51  ;;  %v1439_v32 = vld [vmem:[%s2474_s1 + $0x2a8] sm:$0xf0]  ;;  %v1671_v45 = vld [vmem:[%s2474_s1 + $0x294] sm:$0xf] }
  0x3c   :  { %711 = vmatpush.bf16.msrb.mxu0 %v1366_v4  ;;  %v1466_v4 = vor.u32 %v1679_v59, %v1463_v60  ;;  %v1303_v44 = vld [vmem:[%s2474_s1 + $0x198] sm:$0xf0]  ;;  %v1621_v49 = vld [vmem:[%s2474_s1 + $0x104] sm:$0xf]  ;;  %v1231_v50 = vld [vmem:[%s2474_s1 + $0x108] sm:$0xf0] }
  0x3d   :  { %762 = vmatpush.bf16.msra.mxu2 %v1186_v62  ;;  %v1629_v62 = vld [vmem:[%s2474_s1 + $0x144] sm:$0xf]  ;;  %v1295_v59 = vld [vmem:[%s2474_s1 + $0x188] sm:$0xf0]  ;;  %v129_v10 = vld [vmem:[%s2478_s2] sm:$0x3] }
  0x3e   :  { %750 = vmatpush.bf16.msrb.mxu3 %v1114_v5  ;;  %v1645_v5 = vld [vmem:[%s2474_s1 + $0x1c4] sm:$0xf]  ;;  %v1266_v6 = vor.u32 %v1629_v62, %v1263_v63  ;;  %v1423_v62 = vld [vmem:[%s2474_s1 + $0x288] sm:$0xf0] }
  0x3f   :  { %724 = vmatpush.bf16.msrb.mxu1 %v1430_v12  ;;  %v1659_v12 = vld [vmem:[%s2474_s1 + $0x234] sm:$0xf]  ;;  %v1330_v14 = vor.u32 %v1645_v5, %v1327_v7  ;;  %v1653_v51 = vld [vmem:[%s2474_s1 + $0x204] sm:$0xf]  ;;  %v1487_v0 = vld [vmem:[%s2474_s1 + $0x308] sm:$0xf0] }
  0x40   :  { %712 = vmatpush.bf16.msrb.mxu0 %v1358_v20  ;;  %v1447_v20 = vld [vmem:[%s2474_s1 + $0x2b8] sm:$0xf0]  ;;  %v1685_v63 = vld [vmem:[%s2474_s1 + $0x304] sm:$0xf] }
  0x41   :  { %763 = vmatpush.bf16.msra.mxu2 %v1178_v16  ;;  %v1643_v16 = vld [vmem:[%s2474_s1 + $0x1b4] sm:$0xf]  ;;  %v1450_v27 = vor.u32 %v1675_v19, %v1447_v20  ;;  %v1694_v5 = vld [vmem:[%s2477_s3 + $0x38] sm:$0xff] }
  0x42   :  { %751 = vmatpush.bf16.msrb.mxu3 %v1106_v21  ;;  %v1386_v21 = vor.u32 %v1659_v12, %v1383_v13 }
  0x43   :  { %725 = vmatpush.bf16.msrb.mxu1 %v1422_v31  ;;  %713 = vmatmul.bf16.vlgmr.msrb.gmra.mxu0 %v2205_v34  ;;  %v1673_v31 = vld [vmem:[%s2474_s1 + $0x2a4] sm:$0xf] }
  0x44   :  { %770 = vmatpush.bf16.msra.mxu0 %v1290_v25  ;;  %v1375_v25 = vld [vmem:[%s2474_s1 + $0x228] sm:$0xf0]  ;;  %v1442_v40 = vor.u32 %v1673_v31, %v1439_v32 }
  0x45   :  { %764 = vmatpush.bf16.msra.mxu2 %v1170_v35  ;;  %752 = vmatmul.bf16.vlgmr.msrb.gmra.mxu3 %v1999_v58  ;;  %v1455_v58 = vld [vmem:[%s2474_s1 + $0x2c8] sm:$0xf0]  ;;  %v1378_v33 = vor.u32 %v1657_v24, %v1375_v25  ;;  %v1623_v35 = vld [vmem:[%s2474_s1 + $0x114] sm:$0xf] }
  0x46   :  { %796 = vmatpush.bf16.msra.mxu3 %v1418_v26  ;;  %726 = vmatmul.bf16.vlgmr.msrb.gmra.mxu1 %v2216_v41  ;;  %v1458_v15 = vor.u32 %v1677_v8, %v1455_v58  ;;  %v1322_v26 = vor.u32 %v1643_v16, %v1319_v18  ;;  %v1242_v43 = vor.u32 %v1623_v35, %v1239_v36  ;;  %v1687_v58 = vld [vmem:[%s2477_s3] sm:$0xff] }
  0x47   :  { %783 = vmatpush.bf16.msra.mxu1 %v1354_v38  ;;  %v1367_v38 = vld [vmem:[%s2474_s1 + $0x218] sm:$0xf0] }
  0x48   :  { %771 = vmatpush.bf16.msra.mxu0 %v1282_v42  ;;  %765 = vmatmul.bf16.vlgmr.msra.gmra.mxu2 %v2018_v3  ;;  %v1338_v3 = vor.u32 %v1647_v54, %v1335_v57  ;;  %v1639_v42 = vld [vmem:[%s2474_s1 + $0x194] sm:$0xf]  ;;  %v1370_v48 = vor.u32 %v1655_v37, %v1367_v38  ;;  %v1637_v57 = vld [vmem:[%s2474_s1 + $0x184] sm:$0xf] }
  0x49   :  { %809 = vmatpush.bf16.msrb.mxu2 %v1482_v39  ;;  %v1314_v39 = vor.u32 %v1641_v28, %v1311_v30  ;;  %v1298_v1 = vor.u32 %v1637_v57, %v1295_v59  ;;  %v1700_v30 = vld [vmem:[%s2477_s3 + $0x68] sm:$0xff] }
  0x4a   :  { %797 = vmatpush.bf16.msra.mxu3 %v1410_v47  ;;  %v1431_v47 = vld [vmem:[%s2474_s1 + $0x298] sm:$0xf0] }
  0x4b   :  { %784 = vmatpush.bf16.msra.mxu1 %v1346_v52  ;;  %v1359_v52 = vld [vmem:[%s2474_s1 + $0x208] sm:$0xf0]  ;;  %v1434_v54 = vor.u32 %v1671_v45, %v1431_v47  ;;  %v1695_v45 = vld [vmem:[%s2477_s3 + $0x40] sm:$0xff] }
  0x4c   :  { %772 = vmatpush.bf16.msra.mxu0 %v1274_v56  ;;  %v1234_v56 = vor.u32 %v1621_v49, %v1231_v50  ;;  %v1362_v60 = vor.u32 %v1653_v51, %v1359_v52  ;;  %v132_v49 = vperm.slane %v129_v10, 1 }
  0x4d   :  { %810 = vmatpush.bf16.msrb.mxu2 %v1474_v53  ;;  %v1306_v53 = vor.u32 %v1639_v42, %v1303_v44  ;;  %v1696_v44 = vld [vmem:[%s2477_s3 + $0x48] sm:$0xff] }
  0x4e   :  { %798 = vmatpush.bf16.msra.mxu3 %v1402_v61  ;;  %v1669_v61 = vld [vmem:[%s2474_s1 + $0x284] sm:$0xf] }
  0x4f   :  { %785 = vmatpush.bf16.msra.mxu1 %v1338_v3  ;;  %v1426_v3 = vor.u32 %v1669_v61, %v1423_v62 }
  0x50   :  { %773 = vmatpush.bf16.msra.mxu0 %v1266_v6  ;;  %v1688_v6 = vld [vmem:[%s2477_s3 + $0x8] sm:$0xff] }
  0x51   :  { %811 = vmatpush.bf16.msrb.mxu2 %v1466_v4  ;;  %v1490_v4 = vor.u32 %v1685_v63, %v1487_v0 }
  0x52   :  { %799 = vmatpush.bf16.msra.mxu3 %v1394_v9 }
  0x53   :  { %786 = vmatpush.bf16.msra.mxu1 %v1330_v14  ;;  %v131_v14 = vperm.slane %v129_v10, 0  ;;  %v1711_v10 = vld [vmem:[%s2476_s4] ss:$0 sm:$0xff] }
  0x54   :  { %774 = vmatpush.bf16.msra.mxu0 %v1258_v17 }
  0x55   :  { %812 = vmatpush.bf16.msrb.mxu2 %v1458_v15 }
  0x56   :  { %800 = vmatpush.bf16.msra.mxu3 %v1386_v21  ;;  %v1702_v21 = vld [vmem:[%s2477_s3 + $0x78] sm:$0xff] }
  0x57   :  { %787 = vmatpush.bf16.msra.mxu1 %v1322_v26  ;;  %v1701_v26 = vld [vmem:[%s2477_s3 + $0x70] sm:$0xff] }
  0x58   :  { %775 = vmatpush.bf16.msra.mxu0 %v1250_v29 }
  0x59   :  { %813 = vmatpush.bf16.msrb.mxu2 %v1450_v27 }
  0x5a   :  { %801 = vmatpush.bf16.msra.mxu3 %v1378_v33  ;;  %v1699_v33 = vld [vmem:[%s2477_s3 + $0x60] sm:$0xff] }
  0x5b   :  { %788 = vmatpush.bf16.msra.mxu1 %v1314_v39  ;;  %v1698_v39 = vld [vmem:[%s2477_s3 + $0x58] sm:$0xff] }
  0x5c   :  { %776 = vmatpush.bf16.msra.mxu0 %v1242_v43 }
  0x5d   :  { %814 = vmatpush.bf16.msrb.mxu2 %v1442_v40  ;;  %v1697_v40 = vld [vmem:[%s2477_s3 + $0x50] sm:$0xff] }
  0x5e   :  { %802 = vmatpush.bf16.msra.mxu3 %v1370_v48 }
  0x5f   :  { %789 = vmatpush.bf16.msra.mxu1 %v1306_v53 }
  0x60   :  { %777 = vmatpush.bf16.msra.mxu0 %v1234_v56 }
  0x61   :  { %815 = vmatpush.bf16.msrb.mxu2 %v1434_v54 }
  0x62   :  { %803 = vmatpush.bf16.msra.mxu3 %v1362_v60 }
  0x63   :  { %790 = vmatpush.bf16.msra.mxu1 %v1298_v1  ;;  %778 = vmatmul.bf16.vlgmr.msra.gmra.mxu0 %v1997_v55  ;;  %v1693_v55 = vld [vmem:[%s2477_s3 + $0x30] sm:$0xff] }
  0x65   :  { %804 = vmatmul.bf16.vlgmr.msra.gmra.mxu3 %v2205_v34  ;;  %816 = vmatpush.bf16.msrb.mxu2 %v1426_v3  ;;  %v1692_v34 = vld [vmem:[%s2477_s3 + $0x28] sm:$0xff] }
  0x66   :  { %791 = vmatmul.bf16.vlgmr.msra.gmra.mxu1 %v2016_v2  ;;  %v1691_v2 = vld [vmem:[%s2477_s3 + $0x20] sm:$0xff]  ;;  %984 = vmatpush.bf16.msrb.mxu3 %v1702_v21 }
  0x67   :  { %971 = vmatpush.bf16.msrb.mxu1 %v1694_v5 }
  0x68   :  { %817 = vmatmul.bf16.vlgmr.msrb.gmra.mxu2 %v2216_v41  ;;  %v1689_v41 = vld [vmem:[%s2477_s3 + $0x10] sm:$0xff] }
  0x69   :  { %829 = vmatpush.bf16.msra.mxu2 %v1490_v4 }
  0x6a   :  { %985 = vmatpush.bf16.msrb.mxu3 %v1701_v26 }
  0x6b   :  { %972 = vmatpush.bf16.msrb.mxu1 %v1693_v55  ;;  %v1710_v55 = vld [vmem:[%s2480_s5 + $0x38] sm:$0xff] }
  0x6c   :  { %1067 = vmatpush.bf16.msrb.mxu0 %v1710_v55 }
  0x6e   :  { %986 = vmatpush.bf16.msrb.mxu3 %v1700_v30 }
  0x6f   :  { %973 = vmatpush.bf16.msrb.mxu1 %v1692_v34  ;;  %v1709_v34 = vld [vmem:[%s2480_s5 + $0x30] sm:$0xff] }
  0x70   :  { %1068 = vmatpush.bf16.msrb.mxu0 %v1709_v34 }
  0x72   :  { %987 = vmatpush.bf16.msrb.mxu3 %v1699_v33 }
  0x73   :  { %974 = vmatpush.bf16.msrb.mxu1 %v1691_v2  ;;  %v1708_v2 = vld [vmem:[%s2480_s5 + $0x28] sm:$0xff] }
  0x74   :  { %1069 = vmatpush.bf16.msrb.mxu0 %v1708_v2 }
  0x76   :  { %988 = vmatpush.bf16.msrb.mxu3 %v1698_v39 }
  0x78   :  { %1492 = vmatmul.msk.bf16.vlgmr.msra.gmra.mxu2 %vm649_vm0, %v2108_v46  ;;  %v1690_v46 = vld [vmem:[%s2477_s3 + $0x18] sm:$0xff] }
  0x79   :  { %975 = vmatpush.bf16.msrb.mxu1 %v1690_v46  ;;  %v1707_v46 = vld [vmem:[%s2480_s5 + $0x20] sm:$0xff] }
  0x7a   :  { %989 = vmatpush.bf16.msrb.mxu3 %v1697_v40  ;;  %1070 = vmatpush.bf16.msrb.mxu0 %v1707_v46 }
  0x7d   :  { %976 = vmatpush.bf16.msrb.mxu1 %v1689_v41  ;;  %v1706_v41 = vld [vmem:[%s2480_s5 + $0x18] sm:$0xff] }
  0x7e   :  { %990 = vmatpush.bf16.msrb.mxu3 %v1696_v44  ;;  %1071 = vmatpush.bf16.msrb.mxu0 %v1706_v41 }
  0x81   :  { %977 = vmatpush.bf16.msrb.mxu1 %v1688_v6  ;;  %v1705_v6 = vld [vmem:[%s2480_s5 + $0x10] sm:$0xff] }
  0x82   :  { %991 = vmatpush.bf16.msrb.mxu3 %v1695_v45  ;;  %1072 = vmatpush.bf16.msrb.mxu0 %v1705_v6 }
  0x85   :  { %978 = vmatpush.bf16.msrb.mxu1 %v1687_v58  ;;  %v1704_v58 = vld [vmem:[%s2480_s5 + $0x8] sm:$0xff] }
  0x86   :  { %1073 = vmatpush.bf16.msrb.mxu0 %v1704_v58 }
  0xa0   :  { %v662_v7 = vpop.f32.mrf.mxu0 }
  0xa1   :  { %v663_v16 = vadd.f32 %v662_v7, %v131_v14 }
  0xa3   :  { %v675_v8 = vpop.f32.mrf.mxu1 }
  0xa4   :  { %v676_v18 = vadd.f32 %v675_v8, %v663_v16 }
  0xa7   :  { %v688_v9 = vpop.f32.mrf.mxu2 }
  0xa8   :  { %v701_v11 = vpop.f32.mrf.mxu3  ;;  %v664_v12 = vpop.f32.mrf.mxu0  ;;  %v689_v20 = vadd.f32 %v688_v9, %v676_v18  ;;  %v1703_v9 = vld [vmem:[%s2480_s5] sm:$0xff] }
  0xa9   :  { %1074 = vmatpush.bf16.msrb.mxu0 %v1703_v9 }
  0xaa   :  { %v702_v22 = vadd.f32 %v701_v11, %v689_v20 }
  0xab   :  { %v677_v13 = vpop.f32.mrf.mxu1 }
  0xaf   :  { %v690_v15 = vpop.f32.mrf.mxu2 }
  0xb0   :  { %v703_v17 = vpop.f32.mrf.mxu3 }
  0xb1   :  { %v1080_v17 = vlaneseq }
  0xb3   :  { %v1081_v18 = vand.u32 127, %v1080_v17 }
  0xb5   :  { %vm1082_vm1 = vcmp.lt.s32.totalorder %v1081_v18, 10 }
  0xb7   :  { %v740_v19 = vpop.f32.mrf.mxu2 }
  0xbf   :  { %v742_v25 = vpop.f32.mrf.mxu2 }
  0xc0   :  { %v714_v23 = vpop.f32.mrf.mxu0 }
  0xc1   :  { %v715_v24 = vadd.f32 %v714_v23, %v702_v22 }
  0xc3   :  { %v727_v27 = vpop.f32.mrf.mxu1 }
  0xc4   :  { %v728_v28 = vadd.f32 %v727_v27, %v715_v24 }
  0xc6   :  { %v741_v29 = vadd.f32 %v740_v19, %v728_v28  ;;  %v1712_v19 = vld [vmem:[%s2479_s6] ss:$0 sm:$0xff] }
  0xc8   :  { %v835_v31 = vmax.f32 %v741_v29, 0.0  ;;  %v716_v32 = vpop.f32.mrf.mxu0  ;;  %v753_v37 = vpop.f32.mrf.mxu3 }
  0xc9   :  { %v754_v52 = vadd.f32 %v753_v37, %v132_v49 }
  0xca   :  { %v837_v35 = vpack.c.bf16 %v835_v31, %v835_v31 }
  0xcb   :  { %v766_v36 = vpop.f32.mrf.mxu2  ;;  %v729_v38 = vpop.f32.mrf.mxu1 }
  0xcc   :  { %979 = vmatmul.bf16.vlgmr.msrb.gmra.mxu1 %v837_v35  ;;  %v767_v56 = vadd.f32 %v766_v36, %v754_v52 }
  0xd0   :  { %v755_v43 = vpop.f32.mrf.mxu3 }
  0xd3   :  { %v768_v42 = vpop.f32.mrf.mxu2 }
  0xe0   :  { %v779_v47 = vpop.f32.mrf.mxu0 }
  0xe1   :  { %v780_v57 = vadd.f32 %v779_v47, %v767_v56 }
  0xe3   :  { %v792_v48 = vpop.f32.mrf.mxu1 }
  0xe4   :  { %v793_v61 = vadd.f32 %v792_v48, %v780_v57 }
  0xe8   :  { %v805_v50 = vpop.f32.mrf.mxu3  ;;  %v781_v51 = vpop.f32.mrf.mxu0 }
  0xe9   :  { %v806_v62 = vadd.f32 %v805_v50, %v793_v61 }
  0xeb   :  { %v818_v53 = vpop.f32.mrf.mxu2  ;;  %v794_v54 = vpop.f32.mrf.mxu1 }
  0xec   :  { %v819_v63 = vadd.f32 %v818_v53, %v806_v62 }
  0xf0   :  { %v807_v59 = vpop.f32.mrf.mxu3 }
  0xf3   :  { %v820_v60 = vpop.f32.mrf.mxu2 }
  0xfb   :  { %v831_v0 = vpop.f32.mrf.mxu2 }
  0xfc   :  { %v832_v1 = vadd.f32 %v831_v0, %v819_v63 }
  0xfe   :  { %v836_v3 = vmax.f32 %v832_v1, 0.0 }
 0x100   :  { %v838_v4 = vpack.c.bf16 %v836_v3, %v836_v3 }
 0x102   :  { %992 = vmatmul.bf16.vlgmr.msrb.gmra.mxu3 %v838_v4 }
 0x103   :  { %v833_v5 = vpop.f32.mrf.mxu2 }
 0x149   :  { %v980_v7 = vpop.f32.mrf.mxu1 }
 0x14a   :  { %v981_v11 = vadd.f32 %v1711_v10, %v980_v7 }
 0x151   :  { %v982_v8 = vpop.f32.mrf.mxu1 }
 0x185   :  { %v993_v12 = vpop.f32.mrf.mxu3 }
 0x186   :  { %v994_v13 = vadd.f32 %v993_v12, %v981_v11 }
 0x188   :  { %v997_v14 = vmax.f32 %v994_v13, 0.0 }
 0x18a   :  { %v998_v15 = vpack.c.bf16 %v997_v14, %v997_v14 }
 0x18c   :  { %1075 = vmatmul.bf16.vlgmr.msrb.gmra.mxu0 %v998_v15 }
 0x18d   :  { %v995_v16 = vpop.f32.mrf.mxu3 }
 0x209   :  { %v1076_v20 = vpop.f32.mrf.mxu0 }
 0x20a   :  { %v1077_v21 = vadd.f32 %v1712_v19, %v1076_v20 }
 0x20c   :  { %1093 = vst [vmem:[%s2481_s7] sm:$0xff] %v1077_v21  ;;  %v1083_v22 = vsel %vm1082_vm1, %v1077_v21, -1e+30 }
 0x20d   :  { %1084 = vmax.xlane.f32.xlu0 %v1083_v22 }
 0x211   :  { %v1078_v23 = vpop.f32.mrf.mxu0 }
 0x280   :  { %v1085_v24 = vpop.xlane.xlu0 %1084 }
 0x281   :  { %v1086_v25 = vsub.f32 %v1083_v22, %v1085_v24 }
 0x283   :  { %v1087_v26 = vmul.f32 1.442695, %v1086_v25 }
 0x285   :  { %1713 = vpow2.f32 %v1087_v26 }
 0x28b   :  { %v1714_v27 = vpop.eup %1713 }
 0x28c   :  { %1089 = vadd.xlane.f32.xlu0 %v1714_v27 }
 0x2ff   :  { %v1090_v28 = vpop.xlane.xlu0 %1089 }
 0x300   :  { %1715 = vrcp.f32 %v1090_v28 }
 0x306   :  { %v1716_v29 = vpop.eup %1715 }
 0x307   :  { %v1092_v30 = vmul.f32 %v1716_v29, %v1714_v27 }
 0x309   :  { %1094 = vst [vmem:[%s2481_s7 + $0x8] sm:$0xff] %v1092_v30 }

</bundles_post_ra>
